<compile_context>
chip_gen: v7x
topology: tpu7x:2x2x1
jax: 0.10.0
libtpu: 0.0.40
codegen_flags: <defaults>
</compile_context>

<pallas_src>
import math
import functools

import jax
import jax.numpy as jnp
from jax import lax
from jax.experimental import pallas as pl
from jax.experimental.pallas import tpu as pltpu


# ---------------------------------------------------------------------------
# Parameter/buffer setup (plain JAX glue): the sinusoidal PE table.
# ---------------------------------------------------------------------------
def make_pe_table(max_len: int, d_model: int) -> jnp.ndarray:
    """Builds the (1, max_len, d_model) sinusoidal positional-en‑coding buffer."""
    position = jnp.arange(0, max_len, dtype=jnp.float32)[:, None]              # (L, 1)
    div_term = jnp.exp(
        jnp.arange(0, d_model, 2, dtype=jnp.float32) * -(math.log(10000.0) / d_model)
    )                                                                           # (ceil(D/2),)
    angles = position * div_term                                                # (L, ceil(D/2))
    pe = jnp.zeros((max_len, d_model), dtype=jnp.float32)
    pe = pe.at[:, 0::2].set(jnp.sin(angles))
    pe = pe.at[:, 1::2].set(jnp.cos(angles)[:, : d_model // 2])
    return pe[None, :, :]                                                       # (1, L, D)


def _round_up(v: int, m: int) -> int:
    return ((v + m - 1) // m) * m


# ---------------------------------------------------------------------------
# Pallas kernel: elementwise add of PE + (optional) inverted dropout.
# Block shapes: x/out = (tb, tr, C), pe = (1, tr, C)  (broadcast over tb).
# ---------------------------------------------------------------------------
def _pe_dropout_kernel(seed_ref, x_ref, pe_ref, o_ref, *,
                       p: float, training: bool, use_hw_prng: bool,
                       two_axis_grid: bool, tile_rows: int, lane_w: int,
                       rows_per_batch: int):
    # Native-dtype add (bf16 stays bf16 on v6e/v7x; f32 path is unchanged).
    y = x_ref[...] + pe_ref[...]

    if training and p > 0.0:
        if p >= 1.0:
            y = jnp.zeros_like(y)
        else:
            shape = y.shape
            scale = jnp.asarray(1.0 / (1.0 - p), y.dtype)
            # Signed 32-bit threshold: keep iff bits >= thresh  (P = 1 - p).
            t = int(round(p * 4294967296.0)) - 2147483648
            thresh = jnp.int32(max(-2147483648, min(2147483647, t)))

            if use_hw_prng:
                # Fast on-device path (~3 VPU ops/element): hardware PRNG,
                # re-seeded per grid step so iteration order is irrelevant.
                if two_axis_grid:
                    pltpu.prng_seed(seed_ref[0], pl.program_id(0), pl.program_id(1))
                else:
                    pltpu.prng_seed(seed_ref[0], pl.program_id(0))
                bits = pltpu.prng_random_bits(shape)
                if bits.dtype != jnp.int32:
                    bits = pltpu.bitcast(bits, jnp.int32)
                keep = bits >= thresh
            else:
                # Portable fallback: 2-round counter hash on the *global* element
                # id (tiling-invariant mask, lowers everywhere incl. interpret).
                # Note: wrapping int32 math; tensors > 2^31 elements would alias.
                if two_axis_grid:
                    b_term = pl.program_id(1)                        # scalar
                else:
                    b_term = lax.broadcasted_iota(jnp.int32, shape, 0)
                row = lax.broadcasted_iota(jnp.int32, shape, 1)
                col = lax.broadcasted_iota(jnp.int32, shape, 2)
                r0 = pl.program_id(0) * tile_rows
                gid = (b_term * rows_per_batch + r0 + row) * lane_w + col

                def _srl(v, k):  # logical right shift on int32
                    return lax.shift_right_logical(v, jnp.full(v.shape, k, jnp.int32))

                h = (gid ^ seed_ref[0]) * jnp.int32(-1640531527)     # 0x9E3779B9
                h = h ^ _srl(h, 16)
                h = h * jnp.int32(0x7FEB352D)
                h = h ^ _srl(h, 15)
                keep = h >= thresh

            y = jnp.where(keep, y * scale, jnp.zeros_like(y))

    o_ref[...] = y.astype(o_ref.dtype)


# ---------------------------------------------------------------------------
# Wrapper: layout choice, tiling, pallas_call.
# ---------------------------------------------------------------------------
def positional_encoding_forward(
    x: jnp.ndarray,
    pe: jnp.ndarray,
    *,
    p: float = 0.1,
    training: bool = False,
    seed: int = 0,
    target_block_bytes: int = 2 * 1024 * 1024,
    batch_fold_bytes: int = 512 * 1024,
    use_hw_prng: bool = False,   # set True on real TPUs for the fastest training path
) -> jnp.ndarray:
    """x: (B, S, D); pe: (1, max_len, D) with max_len >= S.  Returns (B, S, D)."""
    B, S, D = x.shape
    _, max_len, D2 = pe.shape
    assert D2 == D and max_len >= S
    assert 0.0 <= p <= 1.0

    # ---- lane-dense layout: view the (S, D) tail as (R, C) with C % 128 == 0 ----
    if D % 128 == 0:
        C = D                       # already lane-dense
    elif (S * D) % 128 == 0:
        C = 128                     # fold sequence rows into the lane dimension
    else:
        C = D                       # odd tiny d_model: lane-sparse fallback
    R = (S * D) // C
    x_r = x.reshape(B, R, C)

    itemsize = jnp.dtype(x.dtype).itemsize
    gran = max(8, 32 // itemsize)   # sublane alignment: f32->8, bf16->16, int8->32

    # ---- fold the whole batch into one block when a per-batch slab is small ----
    fold_batch = (R * C * itemsize <= batch_fold_bytes)
    tb = B if fold_batch else 1
    two_axis = not fold_batch

    # ---- row-tile size: ~target_block_bytes per buffer, gran-aligned ----
    target_rows = max(gran, target_block_bytes // max(1, tb * C * itemsize))
    if target_rows >= R or R <= gran:
        tr = R
    else:
        tr = max(gran, (min(target_rows, R) // gran) * gran)

    # v7x has 2 TensorCores: give a "parallel" axis >= 2 steps when possible.
    if (fold_batch or B == 1) and pl.cdiv(R, tr) == 1 and R >= 2 * gran:
        half = _round_up((R + 1) // 2, gran)
        if half < R:
            tr = half
    num_r = pl.cdiv(R, tr)

    # ---- PE operand: reuse the full table via the BlockSpec where legal ----
    if (max_len * D) % C == 0:
        pe_rows_full = (max_len * D) // C
    else:
        pe_rows_full = None
    if pe_rows_full is not None and (tr % 8 == 0 or tr == pe_rows_full):
        pe_r = pe.reshape(1, pe_rows_full, C)                     # pure reshape
    else:
        pe_r = lax.slice(pe, (0, 0, 0), (1, S, D)).reshape(1, R, C)
    pe_r = pe_r.astype(x.dtype)                                   # bf16-native stream

    seed_arr = jnp.array([seed], dtype=jnp.int32)
    kernel = functools.partial(
        _pe_dropout_kernel, p=float(p), training=bool(training),
        use_hw_prng=bool(use_hw_prng), two_axis_grid=two_axis,
        tile_rows=tr, lane_w=C, rows_per_batch=R)

    if two_axis:
        # Row-tile outer, batch inner: PE block index is constant along the inner
        # axis, so each PE tile is fetched once and reused for all batches.
        grid = (num_r, B)
        x_spec = pl.BlockSpec((1, tr, C), lambda r, b, seed: (b, r, 0))
        pe_spec = pl.BlockSpec((1, tr, C), lambda r, b, seed: (0, r, 0))
        out_spec = pl.BlockSpec((1, tr, C), lambda r, b, seed: (b, r, 0))
        dims = ("parallel", "parallel")
    else:
        grid = (num_r,)
        x_spec = pl.BlockSpec((B, tr, C), lambda r, seed: (0, r, 0))
        pe_spec = pl.BlockSpec((1, tr, C), lambda r, seed: (0, r, 0))
        out_spec = pl.BlockSpec((B, tr, C), lambda r, seed: (0, r, 0))
        dims = ("parallel",)

    out = pl.pallas_call(
        kernel,
        out_shape=jax.ShapeDtypeStruct((B, R, C), x.dtype),
        grid_spec=pltpu.PrefetchScalarGridSpec(
            num_scalar_prefetch=1,
            grid=grid,
            in_specs=[x_spec, pe_spec],
            out_specs=out_spec,
        ),
        compiler_params=pltpu.CompilerParams(dimension_semantics=dims),
        cost_estimate=pl.CostEstimate(
            flops=2 * B * R * C,
            transcendentals=0,
            bytes_accessed=(2 * B * R * C + R * C) * itemsize,
        ),
    )(seed_arr, x_r, pe_r)

    return out.reshape(B, S, D)


if __name__ == "__main__":
    # --- shape 1: small (batch, seq, d_model); exercises the folded-batch path -
    B, S, D = 2, 8, 32
    MAX_LEN = 64
    key = jax.random.PRNGKey(0)
    x = jax.random.normal(key, (B, S, D), dtype=jnp.float32)
    pe = make_pe_table(MAX_LEN, D)
    ref = x + pe[:, :S]

    # Eval mode (dropout is identity): exact match with the reference.
    out_eval = jax.block_until_ready(positional_encoding_forward(x, pe, p=0.1, training=False))
    assert out_eval.shape == (B, S, D)
    assert jnp.allclose(out_eval, ref, atol=1e-6, rtol=1e-6), "eval-mode mismatch"

    # Train mode exercises the in-kernel dropout (inverted, p=0.1, hash path).
    out_train = jax.block_until_ready(
        positional_encoding_forward(x, pe, p=0.1, training=True, seed=42))
    assert out_train.shape == (B, S, D)
    scaled = ref * jnp.float32(1.0 / 0.9)
    dropped = jnp.isclose(out_train, 0.0, atol=1e-7)
    kept_ok = jnp.isclose(out_train, scaled, atol=1e-5, rtol=1e-5)
    assert bool(jnp.all(dropped | kept_ok)), "train-mode dropout semantics mismatch"
    n_drop = int(jnp.sum(jnp.logical_and(dropped, ~kept_ok)))
    n_keep = int(jnp.sum(jnp.logical_and(kept_ok, ~dropped)))
    assert n_drop > 0 and n_keep > 0, "dropout mask degenerate"

    # --- shape 2: d_model multiple of 128; small blocks force a multi-tile grid
    #     with a partial last row-tile.  Run both the folded-batch path and the
    #     per-batch (two-axis grid) path. --------------------------------------
    B2, S2, D2 = 2, 136, 256
    MAX_LEN2 = 160
    x2 = jax.random.normal(jax.random.PRNGKey(1), (B2, S2, D2), dtype=jnp.float32)
    pe2 = make_pe_table(MAX_LEN2, D2)
    ref2 = x2 + pe2[:, :S2]

    out2 = jax.block_until_ready(
        positional_encoding_forward(x2, pe2, p=0.1, training=False,
                                    target_block_bytes=64 * 1024))          # folded batch
    assert out2.shape == (B2, S2, D2)
    assert jnp.allclose(out2, ref2, atol=1e-6, rtol=1e-6), "tiled eval-mode mismatch (folded)"

    out2b = jax.block_until_ready(
        positional_encoding_forward(x2, pe2, p=0.1, training=False,
                                    target_block_bytes=64 * 1024,
                                    batch_fold_bytes=0))                     # per-batch grid
    assert jnp.allclose(out2b, ref2, atol=1e-6, rtol=1e-6), "tiled eval-mode mismatch (2-axis)"

    out2_tr = jax.block_until_ready(
        positional_encoding_forward(x2, pe2, p=0.1, training=True, seed=7,
                                    target_block_bytes=64 * 1024,
                                    batch_fold_bytes=0))
    scaled2 = ref2 * jnp.float32(1.0 / 0.9)
    ok2 = jnp.isclose(out2_tr, 0.0, atol=1e-7) | jnp.isclose(out2_tr, scaled2,
                                                             atol=1e-5, rtol=1e-5)
    assert bool(jnp.all(ok2)), "tiled train-mode dropout semantics mismatch"

    # TODO(synk): flip use_hw_prng=True on real hardware for the fastest training
    # path (hardware PRNG); the default counter-hash path is kept as the portable
    # default so the same script also runs under the TPU interpret mode.
    print("KERNEL_OK")
</pallas_src>

<mosaic_0001>
module attributes {stable_mosaic.version = 11 : i64} {
  func.func @_pe_dropout_kernel(%arg0: i32, %arg1: memref<1xi32, #tpu.memory_space<smem>>, %arg2: memref<2x2x128xf32, #tpu.memory_space<vmem>>, %arg3: memref<1x2x128xf32, #tpu.memory_space<vmem>>, %arg4: memref<2x2x128xf32, #tpu.memory_space<vmem>>) attributes {dimension_semantics = [#tpu.dimension_semantics<parallel>], iteration_bounds = array<i64: 1>, scalar_prefetch = 1 : i64, scratch_operands = 0 : i64, tpu.core_type = #tpu.core_type<tc>, window_params = [{transform_indices = @transform_0, window_bounds = array<i64: 2, 2, 128>}, {transform_indices = @transform_1, window_bounds = array<i64: 1, 2, 128>}, {transform_indices = @transform_2, window_bounds = array<i64: 2, 2, 128>}]} {
    %c0 = arith.constant 0 : index
    %c0_0 = arith.constant 0 : index
    %c0_1 = arith.constant 0 : index
    %0 = vector.load %arg2[%c0, %c0_0, %c0_1] : memref<2x2x128xf32, #tpu.memory_space<vmem>>, vector<2x2x128xf32>
    %c0_2 = arith.constant 0 : index
    %c0_3 = arith.constant 0 : index
    %c0_4 = arith.constant 0 : index
    %1 = vector.load %arg3[%c0_2, %c0_3, %c0_4] : memref<1x2x128xf32, #tpu.memory_space<vmem>>, vector<1x2x128xf32>
    %2 = vector.broadcast %1 : vector<1x2x128xf32> to vector<2x2x128xf32>
    %3 = arith.addf %0, %2 : vector<2x2x128xf32>
    %c0_5 = arith.constant 0 : index
    %c0_6 = arith.constant 0 : index
    %c0_7 = arith.constant 0 : index
    %4 = vector.load %arg4[%c0_5, %c0_6, %c0_7] : memref<2x2x128xf32, #tpu.memory_space<vmem>>, vector<2x2x128xf32>
    tpu.vector_store %arg4[%c0_5, %c0_6, %c0_7], %3 {strides = array<i32>} : memref<2x2x128xf32, #tpu.memory_space<vmem>>, vector<2x2x128xf32>,
    return
  }
  func.func @transform_0(%arg0: i32, %arg1: memref<1xi32, #tpu.memory_space<smem>>) -> (i32, i32, i32) {
    %c0_i32 = arith.constant 0 : i32
    %c0_i32_0 = arith.constant 0 : i32
    %c0_i32_1 = arith.constant 0 : i32
    return %c0_i32, %arg0, %c0_i32_0 : i32, i32, i32
  }
  func.func @transform_1(%arg0: i32, %arg1: memref<1xi32, #tpu.memory_space<smem>>) -> (i32, i32, i32) {
    %c0_i32 = arith.constant 0 : i32
    %c0_i32_0 = arith.constant 0 : i32
    %c0_i32_1 = arith.constant 0 : i32
    return %c0_i32, %arg0, %c0_i32_0 : i32, i32, i32
  }
  func.func @transform_2(%arg0: i32, %arg1: memref<1xi32, #tpu.memory_space<smem>>) -> (i32, i32, i32) {
    %c0_i32 = arith.constant 0 : i32
    %c0_i32_0 = arith.constant 0 : i32
    %c0_i32_1 = arith.constant 0 : i32
    return %c0_i32, %arg0, %c0_i32_0 : i32, i32, i32
  }
}

</mosaic_0001>

<bundles_post_ra>
// kernel: tpu_custom_call.1
= control target key start
LH: loop header
LB: loop body
LE: loop exit
PB: predicated region body
PF: predicated region fallthrough
CT: control target
= control target key end

     0   :  { %9 = vsyncpa [#allocation5], 0  ;;  %s161_s0 = inlined_call_operand.<no memory space> [shape: s32[1], index: 0, kind: input, shape index: {}]   ;;  %s162_s1 = inlined_call_operand.hbm [shape: f32[2,2,128], index: 1, kind: input, shape index: {}]   ;;  %s163_s2 = inlined_call_operand.vmem [shape: f32[1,2,128], index: 2, kind: input, shape index: {}]   ;;  %s164_s3 = inlined_call_operand.hbm [shape: f32[2,2,128], index: 3, kind: output, shape index: {}]  }
   0x1   :  { %10 = vsyncpa [#allocation6], 0  ;;  %s104_s12 = smov [#allocation4]   ;;  %s56_s16 = scalar_lea.hbm %s162_s1, 64 }
   0x2   :  { %s16_s13 = sshll.u32 %s104_s12, 4  ;;  %p57_p0 = scmp.ne.s32.totalorder %s162_s1, %s56_s16  ;;  %s17_s13 = int_to_ptr.vmem [resolvable:$true] %s16_s13 }
   0x3   :  { %p60_p1 = scmp.lt.u32.totalorder %s56_s16, %s162_s1 }
   0x5   :  { %p62_p2 = pnand %p60_p1, %p57_p0 }
   0x7   :  { %65 = shalt.err (!%p62_p2)
}
   0x8   :  { %s66_s20 = scalar_lea.vmem %s17_s13, 64  ;;  %p71_p4 = scmp.lt.s32.totalorder %s17_s13, %s17_s13 }
   0x9   :  { %p67_p3 = scmp.ne.s32.totalorder %s17_s13, %s66_s20  ;;  %p72_p5 = scmp.lt.s32.totalorder %s66_s20, %s66_s20 }
   0xb   :  { %p73_p6 = por %p72_p5, %p71_p4 }
   0xd   :  { %p74_p7 = pnand %p73_p6, %p67_p3 }
   0xf   :  { %77 = shalt.err (!%p74_p7)
}
  0x10   :  { %s105_s21 = smov 32   ;;  %s106_s22 = smov 2  }
  0x11   :  { %22 = dma.hbm_to_vmem [thread:$0]  %s162_s1, 64, %s17_s13, [#allocation5], %s105_s21, %s105_s21, %s106_s22  }
  0x12   :  { %100 = dma.done.wait [#allocation5], 64  }
  0x13   :  { %101 = vsyncadd [#allocation5], 4294967232  ;;  %s107_s25 = smov [#allocation7]   ;;  %v28_v0 = vld [vmem:[#allocation4] sm:$0x3] }
  0x14   :  { %s40_s26 = sshll.u32 %s107_s25, 4  ;;  %v30_v1 = vld [vmem:[%s163_s2] sm:$0x3]  ;;  %v29_v2 = vld [vmem:[#allocation4 + $0x2] sm:$0x3]  ;;  %s41_s26 = int_to_ptr.vmem [resolvable:$true] %s40_s26 }
  0x15   :  { %v31_v3 = vadd.f32 %v30_v1, %v28_v0  ;;  %v32_v4 = vadd.f32 %v30_v1, %v29_v2  ;;  %s78_s29 = scalar_lea.vmem %s41_s26, 64  ;;  %p83_p9 = scmp.lt.s32.totalorder %s41_s26, %s41_s26 }
  0x16   :  { %p79_p8 = scmp.ne.s32.totalorder %s41_s26, %s78_s29  ;;  %p84_p10 = scmp.lt.s32.totalorder %s78_s29, %s78_s29 }
  0x17   :  { %33 = vst [vmem:[#allocation7] sm:$0x3] %v31_v3  ;;  %34 = vst [vmem:[#allocation7 + $0x2] sm:$0x3] %v32_v4 }
  0x18   :  { %p85_p11 = por %p84_p10, %p83_p9 }
  0x1a   :  { %p86_p12 = pnand %p85_p11, %p79_p8 }
  0x1c   :  { %89 = shalt.err (!%p86_p12)
}
  0x1d   :  { %s90_s4 = scalar_lea.hbm %s164_s3, 64 }
  0x1e   :  { %p91_p13 = scmp.ne.s32.totalorder %s164_s3, %s90_s4  ;;  %p94_p0 = scmp.lt.u32.totalorder %s90_s4, %s164_s3 }
  0x20   :  { %p96_p1 = pnand %p94_p0, %p91_p13 }
  0x22   :  { %99 = shalt.err (!%p96_p1)
}
  0x23   :  { %46 = dma.vmem_to_hbm [thread:$0]  %s41_s26, 64, %s164_s3, [#allocation6], %s105_s21, %s105_s21, %s106_s22  }
  0x24   :  { %102 = dma.done.wait [#allocation6], 64  }
  0x25   :  { %103 = vsyncadd [#allocation6], 4294967232 }
  0x26   :  { %50 = vsyncpa [#allocation5], 1 }
  0x27   :  { %51 = vsyncpa [#allocation6], 1 }

</bundles_post_ra>
